<compile_context>
chip_gen: v7x
topology: tpu7x:2x2x1
jax: 0.10.0
libtpu: 0.0.40
codegen_flags: <defaults>
</compile_context>

<pallas_src>
import functools

import jax
import jax.numpy as jnp
import numpy as np
from jax.experimental import pallas as pl
from jax.experimental.pallas import tpu as pltpu

# ----------------------------- config (module defaults, small spatial) -------
IN_CHANS = 5
EMBED_DIM = 96
PATCH = 4
BATCH = 2
IMG = 16          # H = W = 16 -> Hp = Wp = 4 -> 16 patches per image
LN_EPS = 1e-5     # PyTorch nn.LayerNorm default
TR_TARGET = 512   # row-tile target (multiple of 8); clamped for tiny inputs


def _round_up(a, b):
    return (a + b - 1) // b * b


# ----------------------------- kernel ----------------------------------------
def patch_embed_kernel(p_ref, wt_ref, bgb_ref, o_ref, *, d_true, eps):
    """p_ref: (TR, Kp) im2col patch rows (zero-padded lanes).
    wt_ref: (Kp, Dp) pre-transposed, zero-padded conv weight (resident).
    bgb_ref: (8, Dp) packed [bias; gamma; beta; 0...] (resident).
    """
    # Patch projection (== the stride-p Conv2d): one MXU contraction per row tile.
    y = jnp.dot(p_ref[...], wt_ref[...], preferred_element_type=jnp.float32)

    bgb = bgb_ref[...].astype(jnp.float32)
    y = y + bgb[0:1, :]                                   # conv bias (pad lanes stay 0)

    # LayerNorm over the TRUE embed dim: one-pass sum / sumsq. Padded lanes of y
    # are exactly zero, so dividing by d_true (not Dp) gives the correct stats.
    inv_d = jnp.float32(1.0 / d_true)
    s1 = jnp.sum(y, axis=-1, keepdims=True)
    s2 = jnp.sum(y * y, axis=-1, keepdims=True)
    mu = s1 * inv_d
    var = s2 * inv_d - mu * mu
    scale = jax.lax.rsqrt(var + eps) * bgb[1:2, :]         # fold rsqrt * gamma
    o_ref[...] = (y - mu) * scale + bgb[2:3, :]


# ----------------------------- wrapper ----------------------------------------
@functools.partial(jax.jit, static_argnames=("patch_size", "use_bf16"))
def _patch_embed_tokens(x, params, patch_size, use_bf16):
    B, C, H, W = x.shape
    D = params["w"].shape[0]
    Hp, Wp = H // patch_size, W // patch_size
    K = C * patch_size * patch_size
    R = B * Hp * Wp

    K_pad = _round_up(K, 128)
    D_pad = _round_up(D, 128)
    TR = min(TR_TARGET, _round_up(R, 8))
    R_pad = _round_up(R, TR)

    # im2col for the stride==kernel conv (fused inside this jit, no extra HBM trip):
    # (B,C,H,W) -> (B,C,Hp,p,Wp,p) -> (B,Hp,Wp,C,p,p) -> (R, K); (c, kh, kw) order
    # matches Conv2d weight flattening.
    # TODO(synk): for very large images, grid over (B, Hp) and DMA (1,C,p,W) slabs of
    # x directly (re-layout in-kernel) instead of materializing the full (R, K) slab.
    patches = x.reshape(B, C, Hp, patch_size, Wp, patch_size)
    patches = patches.transpose(0, 2, 4, 1, 3, 5).reshape(R, K)
    patches = jnp.pad(patches, ((0, R_pad - R), (0, K_pad - K)))

    # Pre-flatten + pre-transpose + zero-pad the conv weight (no in-kernel transpose;
    # zero rows/cols contribute nothing to the matmul and keep padded output lanes 0).
    wt = jnp.pad(params["w"].reshape(D, K).T, ((0, K_pad - K), (0, D_pad - D)))

    if use_bf16:   # fast MXU path on v6e/v7x once the projection is MXU-bound
        patches = patches.astype(jnp.bfloat16)
        wt = wt.astype(jnp.bfloat16)

    # Pack bias / gamma / beta into a single 8-sublane-aligned block (one DMA).
    bgb = jnp.zeros((8, D_pad), jnp.float32)
    bgb = bgb.at[0, :D].set(params["b"])
    bgb = bgb.at[1, :D].set(params["gamma"])
    bgb = bgb.at[2, :D].set(params["beta"])

    kernel = functools.partial(patch_embed_kernel, d_true=float(D), eps=LN_EPS)

    out = pl.pallas_call(
        kernel,
        grid=(R_pad // TR,),
        in_specs=[
            pl.BlockSpec((TR, K_pad), lambda i: (i, 0)),      # row tile of patches
            pl.BlockSpec((K_pad, D_pad), lambda i: (0, 0)),   # weight (resident)
            pl.BlockSpec((8, D_pad), lambda i: (0, 0)),       # packed bias/gamma/beta
        ],
        out_specs=pl.BlockSpec((TR, D_pad), lambda i: (i, 0)),
        out_shape=jax.ShapeDtypeStruct((R_pad, D_pad), jnp.float32),
        compiler_params=pltpu.CompilerParams(
            dimension_semantics=("parallel",),
        ),
    )(patches, wt, bgb)

    # Slice the lane/row padding back off and reshape to (B, L, D) tokens.
    return out[:R, :D].reshape(B, Hp * Wp, D)


def patch_embed(x, params, patch_size=PATCH, use_bf16=False):
    """x: (B, C, H, W) float32. Returns (tokens (B, L, D), Hp, Wp) like the module."""
    _, _, H, W = x.shape
    Hp, Wp = H // patch_size, W // patch_size
    tokens = _patch_embed_tokens(x, params, patch_size, use_bf16)
    return tokens, Hp, Wp


# ----------------------------- pure-JAX reference -----------------------------
def reference(x, params, patch_size=PATCH):
    y = jax.lax.conv_general_dilated(
        x, params["w"],
        window_strides=(patch_size, patch_size),
        padding="VALID",
        dimension_numbers=("NCHW", "OIHW", "NCHW"))
    y = y + params["b"][None, :, None, None]
    B, C, Hp, Wp = y.shape
    y = y.reshape(B, C, Hp * Wp).transpose(0, 2, 1)          # (B, L, D)
    mu = y.mean(-1, keepdims=True)
    var = ((y - mu) ** 2).mean(-1, keepdims=True)
    y = (y - mu) / jnp.sqrt(var + LN_EPS) * params["gamma"] + params["beta"]
    return y, Hp, Wp


# ----------------------------- parameter init ---------------------------------
def init_params(key):
    k1, k2, k3, k4 = jax.random.split(key, 4)
    return {
        "w": (0.05 * jax.random.normal(k1, (EMBED_DIM, IN_CHANS, PATCH, PATCH))
              ).astype(jnp.float32),
        "b": (0.02 * jax.random.normal(k2, (EMBED_DIM,))).astype(jnp.float32),
        "gamma": (1.0 + 0.1 * jax.random.normal(k3, (EMBED_DIM,))).astype(jnp.float32),
        "beta": (0.02 * jax.random.normal(k4, (EMBED_DIM,))).astype(jnp.float32),
    }


# ----------------------------- main --------------------------------------------
if __name__ == "__main__":
    key = jax.random.PRNGKey(0)
    kx, kp = jax.random.split(key)
    params = init_params(kp)
    x = jax.random.normal(kx, (BATCH, IN_CHANS, IMG, IMG), dtype=jnp.float32)

    out, Hp, Wp = patch_embed(x, params)
    out = jax.block_until_ready(out)

    ref, Hr, Wr = reference(x, params)
    np.testing.assert_allclose(np.asarray(out), np.asarray(ref), rtol=1e-4, atol=1e-4)
    assert (Hp, Wp) == (int(Hr), int(Wr)) == (IMG // PATCH, IMG // PATCH)
    assert out.shape == (BATCH, Hp * Wp, EMBED_DIM)
    print("KERNEL_OK")
</pallas_src>

<mosaic_0001>
module attributes {stable_mosaic.version = 11 : i64} {
  func.func @patch_embed_kernel(%arg0: i32, %arg1: memref<32x128xf32, #tpu.memory_space<vmem>>, %arg2: memref<128x128xf32, #tpu.memory_space<vmem>>, %arg3: memref<8x128xf32, #tpu.memory_space<vmem>>, %arg4: memref<32x128xf32, #tpu.memory_space<vmem>>) attributes {dimension_semantics = [#tpu.dimension_semantics<parallel>], iteration_bounds = array<i64: 1>, scalar_prefetch = 0 : i64, scratch_operands = 0 : i64, tpu.core_type = #tpu.core_type<tc>, window_params = [{transform_indices = @transform_0, window_bounds = array<i64: 32, 128>}, {pipeline_mode = #tpu.pipeline_mode<synchronous>, transform_indices = @transform_1, window_bounds = array<i64: 128, 128>}, {pipeline_mode = #tpu.pipeline_mode<synchronous>, transform_indices = @transform_2, window_bounds = array<i64: 8, 128>}, {transform_indices = @transform_3, window_bounds = array<i64: 32, 128>}]} {
    %c0 = arith.constant 0 : index
    %c0_0 = arith.constant 0 : index
    %0 = vector.load %arg1[%c0, %c0_0] : memref<32x128xf32, #tpu.memory_space<vmem>>, vector<32x128xf32>
    %c0_1 = arith.constant 0 : index
    %c0_2 = arith.constant 0 : index
    %1 = vector.load %arg2[%c0_1, %c0_2] : memref<128x128xf32, #tpu.memory_space<vmem>>, vector<128x128xf32>
    %cst = arith.constant dense<0.000000e+00> : vector<32x128xf32>
    %2 = tpu.matmul %0, %1, %cst {dimension_numbers = #tpu.dot_dimension_numbers<[1], [0], [0], [1], [0, 0, 1, 1], [], []>} : vector<32x128xf32>, vector<128x128xf32>, vector<32x128xf32> -> vector<32x128xf32>
    %c0_3 = arith.constant 0 : index
    %c0_4 = arith.constant 0 : index
    %3 = vector.load %arg3[%c0_3, %c0_4] : memref<8x128xf32, #tpu.memory_space<vmem>>, vector<8x128xf32>
    %4 = vector.extract_strided_slice %3 {offsets = [0, 0], sizes = [1, 128], strides = [1, 1]} : vector<8x128xf32> to vector<1x128xf32>
    %5 = vector.broadcast %4 : vector<1x128xf32> to vector<32x128xf32>
    %6 = arith.addf %2, %5 : vector<32x128xf32>
    %cst_5 = arith.constant dense<0.000000e+00> : vector<32xf32>
    %7 = vector.multi_reduction <add>, %6, %cst_5 [1] : vector<32x128xf32> to vector<32xf32>
    %8 = vector.shape_cast %7 : vector<32xf32> to vector<32x1xf32>
    %9 = arith.mulf %6, %6 : vector<32x128xf32>
    %cst_6 = arith.constant dense<0.000000e+00> : vector<32xf32>
    %10 = vector.multi_reduction <add>, %9, %cst_6 [1] : vector<32x128xf32> to vector<32xf32>
    %11 = vector.shape_cast %10 : vector<32xf32> to vector<32x1xf32>
    %cst_7 = arith.constant 0.010416667 : f32
    %12 = vector.broadcast %cst_7 : f32 to vector<32x1xf32>
    %13 = arith.mulf %8, %12 : vector<32x1xf32>
    %cst_8 = arith.constant 0.010416667 : f32
    %14 = vector.broadcast %cst_8 : f32 to vector<32x1xf32>
    %15 = arith.mulf %11, %14 : vector<32x1xf32>
    %16 = arith.mulf %13, %13 : vector<32x1xf32>
    %17 = arith.subf %15, %16 : vector<32x1xf32>
    %cst_9 = arith.constant 9.99999974E-6 : f32
    %18 = vector.broadcast %cst_9 : f32 to vector<32x1xf32>
    %19 = arith.addf %17, %18 : vector<32x1xf32>
    %20 = math.rsqrt %19 : vector<32x1xf32>
    %21 = vector.extract_strided_slice %3 {offsets = [1, 0], sizes = [1, 128], strides = [1, 1]} : vector<8x128xf32> to vector<1x128xf32>
    %22 = vector.broadcast %20 : vector<32x1xf32> to vector<32x128xf32>
    %23 = vector.broadcast %21 : vector<1x128xf32> to vector<32x128xf32>
    %24 = arith.mulf %22, %23 : vector<32x128xf32>
    %25 = vector.broadcast %13 : vector<32x1xf32> to vector<32x128xf32>
    %26 = arith.subf %6, %25 : vector<32x128xf32>
    %27 = arith.mulf %26, %24 : vector<32x128xf32>
    %28 = vector.extract_strided_slice %3 {offsets = [2, 0], sizes = [1, 128], strides = [1, 1]} : vector<8x128xf32> to vector<1x128xf32>
    %29 = vector.broadcast %28 : vector<1x128xf32> to vector<32x128xf32>
    %30 = arith.addf %27, %29 : vector<32x128xf32>
    %c0_10 = arith.constant 0 : index
    %c0_11 = arith.constant 0 : index
    %31 = vector.load %arg4[%c0_10, %c0_11] : memref<32x128xf32, #tpu.memory_space<vmem>>, vector<32x128xf32>
    tpu.vector_store %arg4[%c0_10, %c0_11], %30 {strides = array<i32>} : memref<32x128xf32, #tpu.memory_space<vmem>>, vector<32x128xf32>,
    return
  }
  func.func @transform_0(%arg0: i32) -> (i32, i32) {
    %c0_i32 = arith.constant 0 : i32
    %c0_i32_0 = arith.constant 0 : i32
    return %arg0, %c0_i32 : i32, i32
  }
  func.func @transform_1(%arg0: i32) -> (i32, i32) {
    %c0_i32 = arith.constant 0 : i32
    %c0_i32_0 = arith.constant 0 : i32
    %c0_i32_1 = arith.constant 0 : i32
    return %c0_i32, %c0_i32_0 : i32, i32
  }
  func.func @transform_2(%arg0: i32) -> (i32, i32) {
    %c0_i32 = arith.constant 0 : i32
    %c0_i32_0 = arith.constant 0 : i32
    %c0_i32_1 = arith.constant 0 : i32
    return %c0_i32, %c0_i32_0 : i32, i32
  }
  func.func @transform_3(%arg0: i32) -> (i32, i32) {
    %c0_i32 = arith.constant 0 : i32
    %c0_i32_0 = arith.constant 0 : i32
    return %arg0, %c0_i32 : i32, i32
  }
}

</mosaic_0001>

<bundles_post_ra>
// kernel: _patch_embed_tokens.1
= control target key start
LH: loop header
LB: loop body
LE: loop exit
PB: predicated region body
PF: predicated region fallthrough
CT: control target
= control target key end

     0   :  { %s464_s0 = inlined_call_operand.vmem [shape: f32[32,128], index: 0, kind: input, shape index: {}]   ;;  %s465_s1 = inlined_call_operand.vmem [shape: f32[128,128], index: 1, kind: input, shape index: {}]   ;;  %s466_s2 = inlined_call_operand.vmem [shape: f32[8,128], index: 2, kind: input, shape index: {}]   ;;  %s467_s3 = inlined_call_operand.hbm [shape: f32[32,128], index: 3, kind: output, shape index: {}]  }
   0x1   :  { %v19_v0 = vld [vmem:[%s465_s1] sm:$0xff]  ;;  %v20_v1 = vld [vmem:[%s465_s1 + $0x8] sm:$0xff]  ;;  %v21_v2 = vld [vmem:[%s465_s1 + $0x10] sm:$0xff] }
   0x2   :  { %v271_v3 = vpack.c.bf16 %v20_v1, %v19_v0  ;;  %v22_v4 = vld [vmem:[%s465_s1 + $0x18] sm:$0xff]  ;;  %v23_v6 = vld [vmem:[%s465_s1 + $0x20] sm:$0xff]  ;;  %v24_v7 = vld [vmem:[%s465_s1 + $0x28] sm:$0xff] }
   0x3   :  { %v275_v5 = vpack.c.bf16 %v22_v4, %v21_v2  ;;  %v279_v8 = vpack.c.bf16 %v24_v7, %v23_v6  ;;  %v15_v9 = vld [vmem:[%s464_s0] sm:$0xff]  ;;  %v17_v10 = vld [vmem:[%s464_s0 + $0x10] sm:$0xff]  ;;  %v26_v12 = vld [vmem:[%s465_s1 + $0x38] sm:$0xff] }
   0x4   :  { %272 = vmatprep.subr.bf16.mxu0 %v271_v3  ;;  %303 = vmatprep.subr.bf16.mxu1 %v271_v3  ;;  %v25_v11 = vld [vmem:[%s465_s1 + $0x30] sm:$0xff] }
   0x5   :  { %274 = vmatpush3.bf16.msra.mxu0 %v271_v3  ;;  %311 = vmatpush3.bf16.msra.mxu1 %v271_v3 }
   0x6   :  { %276 = vmatprep.subr.bf16.mxu0 %v275_v5  ;;  %304 = vmatprep.subr.bf16.mxu1 %v275_v5 }
   0x7   :  { %265 = vmatprep.mubr.f32.mxu0 %v15_v9  ;;  %268 = vmatprep.mubr.f32.mxu1 %v17_v10 }
   0x8   :  { %8 = vsyncpa [#allocation3], 0  ;;  %v283_v13 = vpack.c.bf16 %v26_v12, %v25_v11  ;;  %v27_v14 = vld [vmem:[%s465_s1 + $0x40] sm:$0xff]  ;;  %v28_v15 = vld [vmem:[%s465_s1 + $0x48] sm:$0xff]  ;;  %v36_v28 = vlaneseq }
   0x9   :  { %278 = vmatpush3.bf16.msra.mxu0 %v275_v5  ;;  %312 = vmatpush3.bf16.msra.mxu1 %v275_v5  ;;  %v287_v16 = vpack.c.bf16 %v28_v15, %v27_v14  ;;  %v29_v17 = vld [vmem:[%s465_s1 + $0x50] sm:$0xff]  ;;  %v30_v18 = vld [vmem:[%s465_s1 + $0x58] sm:$0xff]  ;;  %v31_v20 = vld [vmem:[%s465_s1 + $0x60] sm:$0xff] }
   0xa   :  { %280 = vmatprep.subr.bf16.mxu0 %v279_v8  ;;  %305 = vmatprep.subr.bf16.mxu1 %v279_v8  ;;  %v291_v19 = vpack.c.bf16 %v30_v18, %v29_v17  ;;  %v32_v21 = vld [vmem:[%s465_s1 + $0x68] sm:$0xff]  ;;  %v33_v23 = vld [vmem:[%s465_s1 + $0x70] sm:$0xff]  ;;  %v34_v24 = vld [vmem:[%s465_s1 + $0x78] sm:$0xff]  ;;  %v37_v29 = vshrl.u32 %v36_v28, 7 }
   0xb   :  { %v295_v22 = vpack.c.bf16 %v32_v21, %v31_v20  ;;  %v299_v25 = vpack.c.bf16 %v34_v24, %v33_v23  ;;  %v16_v26 = vld [vmem:[%s464_s0 + $0x8] sm:$0xff]  ;;  %v18_v27 = vld [vmem:[%s464_s0 + $0x18] sm:$0xff]  ;;  %v35_v31 = vld [vmem:[%s466_s2] sm:$0xff]  ;;  %s354_s0 = smov [#allocation2]  }
   0xc   :  { %v38_v30 = vsub.s32 0, %v37_v29  ;;  %v187_v11 = vsub.s32 2, %v37_v29  ;;  %s202_s2 = sshll.u32 %s354_s0, 4  ;;  %s203_s2 = int_to_ptr.vmem [resolvable:$true] %s202_s2 }
   0xd   :  { %282 = vmatpush3.bf16.msra.mxu0 %v279_v8  ;;  %313 = vmatpush3.bf16.msra.mxu1 %v279_v8  ;;  %v171_v8 = vsub.s32 1, %v37_v29  ;;  %s330_s26 = scalar_lea.vmem %s203_s2, 512  ;;  %p335_p1 = scmp.lt.s32.totalorder %s203_s2, %s203_s2 }
   0xe   :  { %284 = vmatprep.subr.bf16.mxu0 %v283_v13  ;;  %306 = vmatprep.subr.bf16.mxu1 %v283_v13  ;;  %v39_v32 = vrot.slane %v35_v31, %v38_v30  ;;  %v188_v14 = vrot.slane %v35_v31, %v187_v11  ;;  %p331_p0 = scmp.ne.s32.totalorder %s203_s2, %s330_s26  ;;  %p336_p2 = scmp.lt.s32.totalorder %s330_s26, %s330_s26 }
   0xf   :  { %v172_v10 = vrot.slane %v35_v31, %v171_v8 }
  0x10   :  { %p337_p3 = por %p336_p2, %p335_p1 }
  0x11   :  { %286 = vmatpush3.bf16.msra.mxu0 %v283_v13  ;;  %314 = vmatpush3.bf16.msra.mxu1 %v283_v13 }
  0x12   :  { %288 = vmatprep.subr.bf16.mxu0 %v287_v16  ;;  %307 = vmatprep.subr.bf16.mxu1 %v287_v16  ;;  %p338_p4 = pnand %p337_p3, %p331_p0 }
  0x15   :  { %290 = vmatpush3.bf16.msra.mxu0 %v287_v16  ;;  %315 = vmatpush3.bf16.msra.mxu1 %v287_v16 }
  0x16   :  { %292 = vmatprep.subr.bf16.mxu0 %v291_v19  ;;  %308 = vmatprep.subr.bf16.mxu1 %v291_v19 }
  0x19   :  { %294 = vmatpush3.bf16.msra.mxu0 %v291_v19  ;;  %316 = vmatpush3.bf16.msra.mxu1 %v291_v19 }
  0x1a   :  { %296 = vmatprep.subr.bf16.mxu0 %v295_v22  ;;  %309 = vmatprep.subr.bf16.mxu1 %v295_v22 }
  0x1d   :  { %298 = vmatpush3.bf16.msra.mxu0 %v295_v22  ;;  %317 = vmatpush3.bf16.msra.mxu1 %v295_v22 }
  0x1e   :  { %300 = vmatprep.subr.bf16.mxu0 %v299_v25  ;;  %310 = vmatprep.subr.bf16.mxu1 %v299_v25 }
  0x21   :  { %302 = vmatpush3.bf16.msra.mxu0 %v299_v25  ;;  %318 = vmatpush3.bf16.msra.mxu1 %v299_v25 }
  0x24   :  { %266 = vmatmul.mubr.f32.vlgmr.msra.gmra.mrb[0].mxu0 %v16_v26  ;;  %269 = vmatmul.mubr.f32.vlgmr.msra.gmra.mrb[0].mxu1 %v18_v27 }
  0xf7   :  { %v267_v33 = vpop.f32.mrb[0].mxu0  ;;  %v270_v34 = vpop.f32.mrb[0].mxu1 }
  0xf8   :  { %v112_v35 = vadd.f32 %v267_v33, %v39_v32  ;;  %v440_v36 = vadd.f32 %v270_v34, %v39_v32  ;;  %v106_v37 = vpop.f32.mrb[1].mxu0  ;;  %v116_v38 = vpop.f32.mrb[1].mxu1 }
  0xf9   :  { %v107_v39 = vadd.f32 %v106_v37, %v39_v32  ;;  %v443_v40 = vadd.f32 %v116_v38, %v39_v32 }
  0xfa   :  { %131 = vadd.xlane.f32.xlu1 %v440_v36  ;;  %127 = vadd.xlane.f32.xlu0 %v112_v35  ;;  %v134_v41 = vmul.f32 %v112_v35, %v112_v35  ;;  %v136_v43 = vmul.f32 %v440_v36, %v440_v36 }
  0xfb   :  { %v133_v42 = vmul.f32 %v107_v39, %v107_v39  ;;  %v135_v44 = vmul.f32 %v443_v40, %v443_v40 }
  0xfe   :  { %129 = vadd.xlane.f32.xlu1 %v443_v40  ;;  %125 = vadd.xlane.f32.xlu0 %v107_v39 }
 0x102   :  { %139 = vadd.xlane.f32.xlu1 %v134_v41  ;;  %137 = vadd.xlane.f32.xlu0 %v133_v42 }
 0x106   :  { %143 = vadd.xlane.f32.xlu1 %v136_v43  ;;  %141 = vadd.xlane.f32.xlu0 %v135_v44 }
 0x187   :  { %v132_v45 = vpop.xlane.xlu1 %131  ;;  %v128_v46 = vpop.xlane.xlu0 %127 }
 0x188   :  { %v146_v49 = vmul.f32 0.010416667, %v128_v46  ;;  %v148_v51 = vmul.f32 0.010416667, %v132_v45 }
 0x18a   :  { %v154_v54 = vmul.f32 %v146_v49, %v146_v49  ;;  %v156_v63 = vmul.f32 %v148_v51, %v148_v51  ;;  %v178_v15 = vsub.f32 %v112_v35, %v146_v49  ;;  %v180_v23 = vsub.f32 %v440_v36, %v148_v51 }
 0x18b   :  { %v130_v47 = vpop.xlane.xlu1 %129  ;;  %v126_v48 = vpop.xlane.xlu0 %125 }
 0x18c   :  { %v145_v50 = vmul.f32 0.010416667, %v126_v48  ;;  %v147_v58 = vmul.f32 0.010416667, %v130_v47 }
 0x18e   :  { %v153_v55 = vmul.f32 %v145_v50, %v145_v50  ;;  %v155_v3 = vmul.f32 %v147_v58, %v147_v58  ;;  %v177_v17 = vsub.f32 %v107_v39, %v145_v50  ;;  %v179_v26 = vsub.f32 %v443_v40, %v147_v58 }
 0x18f   :  { %v140_v52 = vpop.xlane.xlu1 %139  ;;  %v138_v53 = vpop.xlane.xlu0 %137 }
 0x190   :  { %v150_v56 = vmul.f32 0.010416667, %v140_v52  ;;  %v149_v57 = vmul.f32 0.010416667, %v138_v53 }
 0x192   :  { %v158_v59 = vsub.f32 %v150_v56, %v154_v54  ;;  %v157_v60 = vsub.f32 %v149_v57, %v153_v55 }
 0x193   :  { %v144_v61 = vpop.xlane.xlu1 %143  ;;  %v142_v62 = vpop.xlane.xlu0 %141 }
 0x194   :  { %v162_v0 = vadd.f32 1e-05, %v158_v59  ;;  %v161_v1 = vadd.f32 1e-05, %v157_v60  ;;  %v152_v2 = vmul.f32 0.010416667, %v144_v61 }
 0x195   :  { %v151_v4 = vmul.f32 0.010416667, %v142_v62 }
 0x196   :  { %322 = vrsqrt.f32 %v162_v0  ;;  %v160_v5 = vsub.f32 %v152_v2, %v156_v63 }
 0x197   :  { %324 = vrsqrt.f32 %v161_v1  ;;  %v159_v6 = vsub.f32 %v151_v4, %v155_v3 }
 0x198   :  { %v164_v7 = vadd.f32 1e-05, %v160_v5 }
 0x199   :  { %v163_v9 = vadd.f32 1e-05, %v159_v6 }
 0x19a   :  { %326 = vrsqrt.f32 %v164_v7 }
 0x19b   :  { %328 = vrsqrt.f32 %v163_v9 }
 0x1a0   :  { %v323_v12 = vpop.eup %322 }
 0x1a1   :  { %v325_v13 = vpop.eup %324  ;;  %v174_v16 = vmul.f32 %v323_v12, %v172_v10 }
 0x1a2   :  { %v173_v18 = vmul.f32 %v325_v13, %v172_v10 }
 0x1a3   :  { %v182_v19 = vmul.f32 %v178_v15, %v174_v16 }
 0x1a4   :  { %v327_v20 = vpop.eup %326  ;;  %v181_v21 = vmul.f32 %v177_v17, %v173_v18 }
 0x1a5   :  { %v329_v22 = vpop.eup %328  ;;  %v176_v24 = vmul.f32 %v327_v20, %v172_v10  ;;  %v190_v25 = vadd.f32 %v188_v14, %v182_v19 }
 0x1a6   :  { %v175_v27 = vmul.f32 %v329_v22, %v172_v10  ;;  %v189_v28 = vadd.f32 %v188_v14, %v181_v21 }
 0x1a7   :  { %v184_v29 = vmul.f32 %v180_v23, %v176_v24  ;;  %194 = vst [vmem:[#allocation2 + $0x8] sm:$0xff] %v190_v25 }
 0x1a8   :  { %v183_v30 = vmul.f32 %v179_v26, %v175_v27  ;;  %193 = vst [vmem:[#allocation2] sm:$0xff] %v189_v28 }
 0x1a9   :  { %v192_v31 = vadd.f32 %v188_v14, %v184_v29 }
 0x1aa   :  { %v191_v32 = vadd.f32 %v188_v14, %v183_v30 }
 0x1ab   :  { %196 = vst [vmem:[#allocation2 + $0x18] sm:$0xff] %v192_v31 }
 0x1ac   :  { %195 = vst [vmem:[#allocation2 + $0x10] sm:$0xff] %v191_v32 }
 0x1ad   :  { %341 = shalt.err (!%p338_p4)
}
 0x1ae   :  { %s342_s29 = scalar_lea.hbm %s467_s3, 512 }
 0x1af   :  { %p343_p5 = scmp.ne.s32.totalorder %s467_s3, %s342_s29  ;;  %p346_p6 = scmp.lt.u32.totalorder %s342_s29, %s467_s3 }
 0x1b1   :  { %p348_p7 = pnand %p346_p6, %p343_p5 }
 0x1b3   :  { %351 = shalt.err (!%p348_p7)
}
 0x1b4   :  { %s355_s7 = smov 128   ;;  %s356_s8 = smov 8  }
 0x1b5   :  { %208 = dma.vmem_to_hbm [thread:$0]  %s203_s2, 512, %s467_s3, [#allocation3], %s355_s7, %s355_s7, %s356_s8  }
 0x1b6   :  { %352 = dma.done.wait [#allocation3], 512  }
 0x1b7   :  { %353 = vsyncadd [#allocation3], 4294966784 }
 0x1b8   :  { %212 = vsyncpa [#allocation3], 1 }

</bundles_post_ra>
